<compile_context>
chip_gen: v7x
topology: tpu7x:2x2x1
jax: 0.10.0
libtpu: 0.0.40
codegen_flags: <defaults>
</compile_context>

<pallas_src>
import jax
import jax.numpy as jnp
from jax.experimental import pallas as pl
from jax.experimental.pallas import tpu as pltpu

STATE_SIZE = 200   # module default state_size
LANE = 128
SUBLANE = 8


def _round_up(n, m):
    return ((n + m - 1) // m) * m


def ffn_kernel(x_ref, w1_ref, b1_ref, w2_ref, b2_ref, o_ref):
    # x_ref: (TM, Dp) bf16 | w1/w2: (Dp, Dp) bf16 | b1/b2: (1, Dp) f32
    h = jnp.dot(x_ref[...], w1_ref[...],
                preferred_element_type=jnp.float32) + b1_ref[...]
    h = jnp.maximum(h, 0.0)                                   # ReLU in f32
    y = jnp.dot(h.astype(jnp.bfloat16), w2_ref[...],
                preferred_element_type=jnp.float32) + b2_ref[...]
    o_ref[...] = y                                            # lane-dense store


def init_params(key, state_size=STATE_SIZE):
    # PyTorch nn.Linear default init: U(-1/sqrt(in), 1/sqrt(in))
    k1, k2, k3, k4 = jax.random.split(key, 4)
    s = 1.0 / float(jnp.sqrt(jnp.float32(state_size)))
    return {
        "w1": jax.random.uniform(k1, (state_size, state_size), jnp.float32, -s, s),
        "b1": jax.random.uniform(k2, (state_size,), jnp.float32, -s, s),
        "w2": jax.random.uniform(k3, (state_size, state_size), jnp.float32, -s, s),
        "b2": jax.random.uniform(k4, (state_size,), jnp.float32, -s, s),
    }


def ffn_forward(x, params, *, row_tile=None):
    """y = relu(x @ W1.T + b1) @ W2.T + b2   (eval-mode dropout == identity)."""
    D = params["w1"].shape[1]
    orig_shape = x.shape
    x2 = x.reshape(-1, D)
    N = x2.shape[0]

    Dp = _round_up(D, LANE)            # 200 -> 256 lanes (full-vreg, unmasked)
    if row_tile is None:
        # Fill the MXU M dimension, but keep >= 2 grid steps so both v7x
        # TensorCores get work; rows stay a multiple of 8 sublanes.
        row_tile = min(256, max(SUBLANE, _round_up(pl.cdiv(N, 2), SUBLANE)))
    Np = _round_up(N, row_tile)

    def pad2(a, rows, cols, dtype):
        out = jnp.zeros((rows, cols), dtype)
        return out.at[:a.shape[0], :a.shape[1]].set(a.astype(dtype))

    # bf16 MXU operands (weights + activations), f32 biases.
    x_p = pad2(x2, Np, Dp, jnp.bfloat16)
    w1_p = pad2(params["w1"].T, Dp, Dp, jnp.bfloat16)
    w2_p = pad2(params["w2"].T, Dp, Dp, jnp.bfloat16)
    b1_p = pad2(params["b1"].reshape(1, -1), 1, Dp, jnp.float32)
    b2_p = pad2(params["b2"].reshape(1, -1), 1, Dp, jnp.float32)

    grid = (Np // row_tile,)
    out = pl.pallas_call(
        ffn_kernel,
        out_shape=jax.ShapeDtypeStruct((Np, Dp), jnp.float32),
        grid=grid,
        in_specs=[
            pl.BlockSpec((row_tile, Dp), lambda i: (i, 0)),   # x tile
            pl.BlockSpec((Dp, Dp), lambda i: (0, 0)),         # W1 (resident)
            pl.BlockSpec((1, Dp), lambda i: (0, 0)),          # b1
            pl.BlockSpec((Dp, Dp), lambda i: (0, 0)),         # W2 (resident)
            pl.BlockSpec((1, Dp), lambda i: (0, 0)),          # b2
        ],
        out_specs=pl.BlockSpec((row_tile, Dp), lambda i: (i, 0)),
        compiler_params=pltpu.CompilerParams(
            dimension_semantics=("parallel",)),
    )(x_p, w1_p, b1_p, w2_p, b2_p)

    return out[:N, :D].reshape(orig_shape)


def ffn_reference(x, params):
    """Pure-JAX (f32) reference mirroring the PyTorch forward in eval mode."""
    h = jnp.maximum(x @ params["w1"].T + params["b1"], 0.0)
    return h @ params["w2"].T + params["b2"]


if __name__ == "__main__":
    key = jax.random.PRNGKey(0)
    kp, kx = jax.random.split(key)

    B, S = 4, 8                                  # small shapes; M = 32 rows
    params = init_params(kp)
    x = jax.random.normal(kx, (B, S, STATE_SIZE), jnp.float32)

    y = jax.jit(ffn_forward)(x, params)
    jax.block_until_ready(y)

    y_ref = ffn_reference(x, params)
    assert y.shape == (B, S, STATE_SIZE)
    # bf16 MXU operands with f32 accumulation -> loosened tolerance.
    assert jnp.allclose(y, y_ref, atol=3e-2, rtol=3e-2), (
        f"max abs err {float(jnp.max(jnp.abs(y - y_ref)))}")

    print("KERNEL_OK")
</pallas_src>

<mosaic_0001>
module attributes {stable_mosaic.version = 11 : i64} {
  func.func @ffn_kernel(%arg0: i32, %arg1: memref<16x256xbf16, #tpu.memory_space<vmem>>, %arg2: memref<256x256xbf16, #tpu.memory_space<vmem>>, %arg3: memref<1x256xf32, #tpu.memory_space<vmem>>, %arg4: memref<256x256xbf16, #tpu.memory_space<vmem>>, %arg5: memref<1x256xf32, #tpu.memory_space<vmem>>, %arg6: memref<16x256xf32, #tpu.memory_space<vmem>>) attributes {dimension_semantics = [#tpu.dimension_semantics<parallel>], iteration_bounds = array<i64: 2>, scalar_prefetch = 0 : i64, scratch_operands = 0 : i64, tpu.core_type = #tpu.core_type<tc>, window_params = [{transform_indices = @transform_0, window_bounds = array<i64: 16, 256>}, {pipeline_mode = #tpu.pipeline_mode<synchronous>, transform_indices = @transform_1, window_bounds = array<i64: 256, 256>}, {pipeline_mode = #tpu.pipeline_mode<synchronous>, transform_indices = @transform_2, window_bounds = array<i64: 1, 256>}, {pipeline_mode = #tpu.pipeline_mode<synchronous>, transform_indices = @transform_3, window_bounds = array<i64: 256, 256>}, {pipeline_mode = #tpu.pipeline_mode<synchronous>, transform_indices = @transform_4, window_bounds = array<i64: 1, 256>}, {transform_indices = @transform_5, window_bounds = array<i64: 16, 256>}]} {
    %c0 = arith.constant 0 : index
    %c0_0 = arith.constant 0 : index
    %0 = vector.load %arg1[%c0, %c0_0] : memref<16x256xbf16, #tpu.memory_space<vmem>>, vector<16x256xbf16>
    %c0_1 = arith.constant 0 : index
    %c0_2 = arith.constant 0 : index
    %1 = vector.load %arg2[%c0_1, %c0_2] : memref<256x256xbf16, #tpu.memory_space<vmem>>, vector<256x256xbf16>
    %cst = arith.constant dense<0.000000e+00> : vector<16x256xf32>
    %2 = tpu.matmul %0, %1, %cst {dimension_numbers = #tpu.dot_dimension_numbers<[1], [0], [0], [1], [0, 0, 1, 1], [], []>} : vector<16x256xbf16>, vector<256x256xbf16>, vector<16x256xf32> -> vector<16x256xf32>
    %c0_3 = arith.constant 0 : index
    %c0_4 = arith.constant 0 : index
    %3 = vector.load %arg3[%c0_3, %c0_4] : memref<1x256xf32, #tpu.memory_space<vmem>>, vector<1x256xf32>
    %4 = vector.broadcast %3 : vector<1x256xf32> to vector<16x256xf32>
    %5 = arith.addf %2, %4 : vector<16x256xf32>
    %cst_5 = arith.constant 0.000000e+00 : f32
    %6 = vector.broadcast %cst_5 : f32 to vector<16x256xf32>
    %7 = arith.maximumf %5, %6 : vector<16x256xf32>
    %8 = arith.truncf %7 : vector<16x256xf32> to vector<16x256xbf16>
    %c0_6 = arith.constant 0 : index
    %c0_7 = arith.constant 0 : index
    %9 = vector.load %arg4[%c0_6, %c0_7] : memref<256x256xbf16, #tpu.memory_space<vmem>>, vector<256x256xbf16>
    %cst_8 = arith.constant dense<0.000000e+00> : vector<16x256xf32>
    %10 = tpu.matmul %8, %9, %cst_8 {dimension_numbers = #tpu.dot_dimension_numbers<[1], [0], [0], [1], [0, 0, 1, 1], [], []>} : vector<16x256xbf16>, vector<256x256xbf16>, vector<16x256xf32> -> vector<16x256xf32>
    %c0_9 = arith.constant 0 : index
    %c0_10 = arith.constant 0 : index
    %11 = vector.load %arg5[%c0_9, %c0_10] : memref<1x256xf32, #tpu.memory_space<vmem>>, vector<1x256xf32>
    %12 = vector.broadcast %11 : vector<1x256xf32> to vector<16x256xf32>
    %13 = arith.addf %10, %12 : vector<16x256xf32>
    %c0_11 = arith.constant 0 : index
    %c0_12 = arith.constant 0 : index
    %14 = vector.load %arg6[%c0_11, %c0_12] : memref<16x256xf32, #tpu.memory_space<vmem>>, vector<16x256xf32>
    tpu.vector_store %arg6[%c0_11, %c0_12], %13 {strides = array<i32>} : memref<16x256xf32, #tpu.memory_space<vmem>>, vector<16x256xf32>,
    return
  }
  func.func @transform_0(%arg0: i32) -> (i32, i32) {
    %c0_i32 = arith.constant 0 : i32
    %c0_i32_0 = arith.constant 0 : i32
    return %arg0, %c0_i32 : i32, i32
  }
  func.func @transform_1(%arg0: i32) -> (i32, i32) {
    %c0_i32 = arith.constant 0 : i32
    %c0_i32_0 = arith.constant 0 : i32
    %c0_i32_1 = arith.constant 0 : i32
    return %c0_i32, %c0_i32_0 : i32, i32
  }
  func.func @transform_2(%arg0: i32) -> (i32, i32) {
    %c0_i32 = arith.constant 0 : i32
    %c0_i32_0 = arith.constant 0 : i32
    %c0_i32_1 = arith.constant 0 : i32
    return %c0_i32, %c0_i32_0 : i32, i32
  }
  func.func @transform_3(%arg0: i32) -> (i32, i32) {
    %c0_i32 = arith.constant 0 : i32
    %c0_i32_0 = arith.constant 0 : i32
    %c0_i32_1 = arith.constant 0 : i32
    return %c0_i32, %c0_i32_0 : i32, i32
  }
  func.func @transform_4(%arg0: i32) -> (i32, i32) {
    %c0_i32 = arith.constant 0 : i32
    %c0_i32_0 = arith.constant 0 : i32
    %c0_i32_1 = arith.constant 0 : i32
    return %c0_i32, %c0_i32_0 : i32, i32
  }
  func.func @transform_5(%arg0: i32) -> (i32, i32) {
    %c0_i32 = arith.constant 0 : i32
    %c0_i32_0 = arith.constant 0 : i32
    return %arg0, %c0_i32 : i32, i32
  }
}

</mosaic_0001>

<bundles_post_ra>
// kernel: ffn_forward.1
= control target key start
LH: loop header
LB: loop body
LE: loop exit
PB: predicated region body
PF: predicated region fallthrough
CT: control target
= control target key end

     0   :  { %s1033_s18 = smov 0   ;;  %s1256_s0 = inlined_call_operand.vmem [shape: bf16[32,256], index: 0, kind: input, shape index: {}]   ;;  %s1257_s1 = inlined_call_operand.vmem [shape: bf16[256,256], index: 1, kind: input, shape index: {}]   ;;  %s1258_s2 = inlined_call_operand.vmem [shape: f32[1,256], index: 2, kind: input, shape index: {}]   ;;  %s1259_s3 = inlined_call_operand.vmem [shape: bf16[256,256], index: 3, kind: input, shape index: {}]   ;;  %s1260_s4 = inlined_call_operand.vmem [shape: f32[1,256], index: 4, kind: input, shape index: {}]   ;;  %s1261_s5 = inlined_call_operand.vmem [shape: f32[32,256], index: 5, kind: output, shape index: {}]  }
   0x1 LB: > { %s807_s19 = sadd.s32 4294967295, %s1001_s18   ;;  %p811_p0 = scmp.ge.s32.totalorder %s1001_s18, 1  ;;  %s1001_s18 = sphi %s1033_s18, %s15_s18  }
   0x2   : > { %p189_p1 = scmp.lt.s32.totalorder %s1001_s18, 3 }
   0x4   : > { %p190_p2 = pnand %p811_p0, %p189_p1 }
   0x5   : > { %v896_v0 = vld [vmem:[%s1257_s1 + $0x4] ss:$8 sps:$4 sm:$0xff] (!%p190_p2)   ;;  %v898_v1 = vld [vmem:[%s1257_s1] ss:$8 sps:$4 sm:$0xff] (!%p190_p2)   ;;  %v899_v2 = vld [vmem:[%s1257_s1 + $0x14] ss:$8 sps:$4 sm:$0xff] (!%p190_p2)  }
   0x6   : > { %193 = sbr.rel (%p190_p2) target bundleno = 510 (0x1fe), region = 40  ;;  %449 = vmatprep.subr.bf16.mxu0 (!%p190_p2), %v896_v0  ;;  %v901_v3 = vld [vmem:[%s1257_s1 + $0x10] ss:$8 sps:$4 sm:$0xff] (!%p190_p2)   ;;  %v902_v4 = vld [vmem:[%s1257_s1 + $0x24] ss:$8 sps:$4 sm:$0xff] (!%p190_p2)   ;;  %s812_s30 = sshll.u32 (!%p190_p2), %s807_s19, 1 }
   0x7   : > { %450 = vmatpush1.bf16.msra.mxu0 (!%p190_p2), %v898_v1  ;;  %v904_v5 = vld [vmem:[%s1257_s1 + $0x20] ss:$8 sps:$4 sm:$0xff] (!%p190_p2)   ;;  %v905_v6 = vld [vmem:[%s1257_s1 + $0x34] ss:$8 sps:$4 sm:$0xff] (!%p190_p2)   ;;  %p220_p3 = scmp.lt.s32.totalorder (!%p190_p2), %s812_s30, 3 }
   0x8   : > { %451 = vmatprep.subr.bf16.mxu0 (!%p190_p2), %v899_v2  ;;  %v907_v7 = vld [vmem:[%s1257_s1 + $0x30] ss:$8 sps:$4 sm:$0xff] (!%p190_p2)   ;;  %v908_v8 = vld [vmem:[%s1257_s1 + $0x44] ss:$8 sps:$4 sm:$0xff] (!%p190_p2)   ;;  %v910_v9 = vld [vmem:[%s1257_s1 + $0x40] ss:$8 sps:$4 sm:$0xff] (!%p190_p2)   ;;  %v269_v2 = vlaneseq (!%p190_p2) }
   0x9   : > { %v911_v10 = vld [vmem:[%s1257_s1 + $0x54] ss:$8 sps:$4 sm:$0xff] (!%p190_p2)   ;;  %v913_v11 = vld [vmem:[%s1257_s1 + $0x50] ss:$8 sps:$4 sm:$0xff] (!%p190_p2)   ;;  %v914_v12 = vld [vmem:[%s1257_s1 + $0x64] ss:$8 sps:$4 sm:$0xff] (!%p190_p2)  }
   0xa   : > { %v916_v13 = vld [vmem:[%s1257_s1 + $0x60] ss:$8 sps:$4 sm:$0xff] (!%p190_p2)   ;;  %v917_v14 = vld [vmem:[%s1257_s1 + $0x74] ss:$8 sps:$4 sm:$0xff] (!%p190_p2)   ;;  %v947_v16 = vld [vmem:[%s1259_s3 + $0x4] ss:$8 sps:$4 sm:$0xff] (!%p190_p2)  }
   0xb   : > { %452 = vmatpush1.bf16.msra.mxu0 (!%p190_p2), %v901_v3  ;;  %v949_v17 = vld [vmem:[%s1259_s3] ss:$8 sps:$4 sm:$0xff] (!%p190_p2)   ;;  %v950_v18 = vld [vmem:[%s1259_s3 + $0x14] ss:$8 sps:$4 sm:$0xff] (!%p190_p2)   ;;  %702 = vmatprep.subr.bf16.mxu1 (!%p190_p2), %v947_v16  ;;  %v952_v19 = vld [vmem:[%s1259_s3 + $0x10] ss:$8 sps:$4 sm:$0xff] (!%p190_p2)  }
   0xc   : > { %453 = vmatprep.subr.bf16.mxu0 (!%p190_p2), %v902_v4  ;;  %703 = vmatpush1.bf16.msra.mxu1 (!%p190_p2), %v949_v17  ;;  %v919_v20 = vld [vmem:[%s1257_s1 + $0x70] ss:$8 sps:$4 sm:$0xff] (!%p190_p2)   ;;  %v953_v21 = vld [vmem:[%s1259_s3 + $0x24] ss:$8 sps:$4 sm:$0xff] (!%p190_p2)   ;;  %v955_v23 = vld [vmem:[%s1259_s3 + $0x20] ss:$8 sps:$4 sm:$0xff] (!%p190_p2)  }
   0xd   : > { %s1263_s30 = smov (!%p220_p3, %s812_s30), 3  ;;  %704 = vmatprep.subr.bf16.mxu1 %v950_v18  ;;  %v920_v22 = vld [vmem:[%s1257_s1 + $0x84] ss:$8 sps:$4 sm:$0xff]   ;;  %v922_v24 = vld [vmem:[%s1257_s1 + $0x80] ss:$8 sps:$4 sm:$0xff]   ;;  %v270_v3 = vshrl.u32 %v269_v2, 7 }
   0xe   : > { %s886_s19 = sshll.u32 %s1263_s30, 3  ;;  %v956_v25 = vld [vmem:[%s1259_s3 + $0x34] ss:$8 sps:$4 sm:$0xff]   ;;  %v958_v27 = vld [vmem:[%s1259_s3 + $0x30] ss:$8 sps:$4 sm:$0xff]   ;;  %s887_s21 = sshll.u32 %s1263_s30, 4 }
   0xf   : > { %454 = vmatpush1.bf16.msra.mxu0 %v904_v5  ;;  %s1083_s24 = scalar_lea.vmem %s1256_s0, %s886_s19  ;;  %v923_v26 = vld [vmem:[%s1257_s1 + $0x94] ss:$8 sps:$4 sm:$0xff]   ;;  %v925_v28 = vld [vmem:[%s1257_s1 + $0x90] ss:$8 sps:$4 sm:$0xff]   ;;  %v959_v29 = vld [vmem:[%s1259_s3 + $0x44] ss:$8 sps:$4 sm:$0xff]   ;;  %s231_s25 = scalar_lea.vmem %s1261_s5, %s887_s21 }
  0x10   : > { %455 = vmatprep.subr.bf16.mxu0 %v905_v6  ;;  %v946_v15 = vld [vmem:[%s1083_s24 + $0x4] ss:$8 sps:$4 sm:$0xff]   ;;  %705 = vmatpush1.bf16.msra.mxu1 %v952_v19  ;;  %v961_v31 = vld [vmem:[%s1259_s3 + $0x40] ss:$8 sps:$4 sm:$0xff]   ;;  %v962_v33 = vld [vmem:[%s1259_s3 + $0x54] ss:$8 sps:$4 sm:$0xff]  }
  0x11   : > { %481 = vmatprep.mubr.bf16.mxu0 %v946_v15  ;;  %706 = vmatprep.subr.bf16.mxu1 %v953_v21  ;;  %v926_v30 = vld [vmem:[%s1257_s1 + $0xa4] ss:$8 sps:$4 sm:$0xff]   ;;  %v928_v32 = vld [vmem:[%s1257_s1 + $0xa0] ss:$8 sps:$4 sm:$0xff]   ;;  %v929_v34 = vld [vmem:[%s1257_s1 + $0xb4] ss:$8 sps:$4 sm:$0xff]  }
  0x12   : > { %v964_v35 = vld [vmem:[%s1259_s3 + $0x50] ss:$8 sps:$4 sm:$0xff]   ;;  %v965_v37 = vld [vmem:[%s1259_s3 + $0x64] ss:$8 sps:$4 sm:$0xff]   ;;  %v967_v39 = vld [vmem:[%s1259_s3 + $0x60] ss:$8 sps:$4 sm:$0xff]  }
  0x13   : > { %456 = vmatpush1.bf16.msra.mxu0 %v907_v7  ;;  %v931_v36 = vld [vmem:[%s1257_s1 + $0xb0] ss:$8 sps:$4 sm:$0xff]   ;;  %v932_v38 = vld [vmem:[%s1257_s1 + $0xc4] ss:$8 sps:$4 sm:$0xff]   ;;  %v934_v40 = vld [vmem:[%s1257_s1 + $0xc0] ss:$8 sps:$4 sm:$0xff]  }
  0x14   : > { %457 = vmatprep.subr.bf16.mxu0 %v908_v8  ;;  %707 = vmatpush1.bf16.msra.mxu1 %v955_v23  ;;  %v968_v41 = vld [vmem:[%s1259_s3 + $0x74] ss:$8 sps:$4 sm:$0xff]   ;;  %v970_v43 = vld [vmem:[%s1259_s3 + $0x70] ss:$8 sps:$4 sm:$0xff]   ;;  %v971_v45 = vld [vmem:[%s1259_s3 + $0x84] ss:$8 sps:$4 sm:$0xff]  }
  0x15   : > { %708 = vmatprep.subr.bf16.mxu1 %v956_v25  ;;  %v935_v42 = vld [vmem:[%s1257_s1 + $0xd4] ss:$8 sps:$4 sm:$0xff]   ;;  %v937_v44 = vld [vmem:[%s1257_s1 + $0xd0] ss:$8 sps:$4 sm:$0xff]   ;;  %v938_v46 = vld [vmem:[%s1257_s1 + $0xe4] ss:$8 sps:$4 sm:$0xff]  }
  0x16   : > { %v973_v47 = vld [vmem:[%s1259_s3 + $0x80] ss:$8 sps:$4 sm:$0xff]   ;;  %v974_v49 = vld [vmem:[%s1259_s3 + $0x94] ss:$8 sps:$4 sm:$0xff]   ;;  %v976_v51 = vld [vmem:[%s1259_s3 + $0x90] ss:$8 sps:$4 sm:$0xff]  }
  0x17   : > { %458 = vmatpush1.bf16.msra.mxu0 %v910_v9  ;;  %v940_v48 = vld [vmem:[%s1257_s1 + $0xe0] ss:$8 sps:$4 sm:$0xff]   ;;  %v941_v50 = vld [vmem:[%s1257_s1 + $0xf4] ss:$8 sps:$4 sm:$0xff]   ;;  %v943_v52 = vld [vmem:[%s1257_s1 + $0xf0] ss:$8 sps:$4 sm:$0xff]  }
  0x18   : > { %459 = vmatprep.subr.bf16.mxu0 %v911_v10  ;;  %709 = vmatpush1.bf16.msra.mxu1 %v958_v27  ;;  %v977_v53 = vld [vmem:[%s1259_s3 + $0xa4] ss:$8 sps:$4 sm:$0xff]   ;;  %v944_v54 = vld [vmem:[%s1083_s24] ss:$8 sps:$4 sm:$0xff]   ;;  %v980_v56 = vld [vmem:[%s1259_s3 + $0xb4] ss:$8 sps:$4 sm:$0xff]  }
  0x19   : > { %710 = vmatprep.subr.bf16.mxu1 %v959_v29  ;;  %v979_v55 = vld [vmem:[%s1259_s3 + $0xa0] ss:$8 sps:$4 sm:$0xff]   ;;  %v982_v57 = vld [vmem:[%s1259_s3 + $0xb0] ss:$8 sps:$4 sm:$0xff]   ;;  %v983_v58 = vld [vmem:[%s1259_s3 + $0xc4] ss:$8 sps:$4 sm:$0xff]  }
  0x1a   : > { %v985_v59 = vld [vmem:[%s1259_s3 + $0xc0] ss:$8 sps:$4 sm:$0xff]   ;;  %v986_v60 = vld [vmem:[%s1259_s3 + $0xd4] ss:$8 sps:$4 sm:$0xff]   ;;  %v988_v61 = vld [vmem:[%s1259_s3 + $0xd0] ss:$8 sps:$4 sm:$0xff]  }
  0x1b   : > { %460 = vmatpush1.bf16.msra.mxu0 %v913_v11  ;;  %v989_v62 = vld [vmem:[%s1259_s3 + $0xe4] ss:$8 sps:$4 sm:$0xff]   ;;  %v991_v63 = vld [vmem:[%s1259_s3 + $0xe0] ss:$8 sps:$4 sm:$0xff]   ;;  %v992_v0 = vld [vmem:[%s1259_s3 + $0xf4] ss:$8 sps:$4 sm:$0xff]  }
  0x1c   : > { %461 = vmatprep.subr.bf16.mxu0 %v914_v12  ;;  %711 = vmatpush1.bf16.msra.mxu1 %v961_v31  ;;  %v994_v1 = vld [vmem:[%s1259_s3 + $0xf0] ss:$8 sps:$4 sm:$0xff]   ;;  %v271_v4 = vsub.s32 0, %v270_v3  ;;  %v267_v5 = vld [vmem:[%s1258_s2] sm:$0x3]  ;;  %v275_v6 = vsub.s32 1, %v270_v3 }
  0x1d   : > { %712 = vmatprep.subr.bf16.mxu1 %v962_v33  ;;  %v530_v23 = vld [vmem:[%s1260_s4] sm:$0x3] }
  0x1e   : > { %v272_v7 = vrot.slane %v267_v5, %v271_v4  ;;  %v276_v8 = vrot.slane %v267_v5, %v275_v6  ;;  %v539_v25 = vrot.slane %v530_v23, %v275_v6 }
  0x1f   : > { %462 = vmatpush1.bf16.msra.mxu0 %v916_v13 }
  0x20   : > { %463 = vmatprep.subr.bf16.mxu0 %v917_v14  ;;  %713 = vmatpush1.bf16.msra.mxu1 %v964_v35 }
  0x21   : > { %714 = vmatprep.subr.bf16.mxu1 %v965_v37 }
  0x23   : > { %464 = vmatpush1.bf16.msra.mxu0 %v919_v20 }
  0x24   : > { %465 = vmatprep.subr.bf16.mxu0 %v920_v22  ;;  %715 = vmatpush1.bf16.msra.mxu1 %v967_v39 }
  0x25   : > { %716 = vmatprep.subr.bf16.mxu1 %v968_v41 }
  0x27   : > { %466 = vmatpush1.bf16.msra.mxu0 %v922_v24  ;;  %v535_v24 = vrot.slane %v530_v23, %v271_v4 }
  0x28   : > { %467 = vmatprep.subr.bf16.mxu0 %v923_v26  ;;  %717 = vmatpush1.bf16.msra.mxu1 %v970_v43 }
  0x29   : > { %718 = vmatprep.subr.bf16.mxu1 %v971_v45 }
  0x2b   : > { %468 = vmatpush1.bf16.msra.mxu0 %v925_v28 }
  0x2c   : > { %469 = vmatprep.subr.bf16.mxu0 %v926_v30  ;;  %719 = vmatpush1.bf16.msra.mxu1 %v973_v47 }
  0x2d   : > { %720 = vmatprep.subr.bf16.mxu1 %v974_v49 }
  0x2f   : > { %470 = vmatpush1.bf16.msra.mxu0 %v928_v32 }
  0x30   : > { %471 = vmatprep.subr.bf16.mxu0 %v929_v34  ;;  %721 = vmatpush1.bf16.msra.mxu1 %v976_v51 }
  0x31   : > { %722 = vmatprep.subr.bf16.mxu1 %v977_v53 }
  0x33   : > { %472 = vmatpush1.bf16.msra.mxu0 %v931_v36 }
  0x34   : > { %473 = vmatprep.subr.bf16.mxu0 %v932_v38  ;;  %723 = vmatpush1.bf16.msra.mxu1 %v979_v55 }
  0x35   : > { %724 = vmatprep.subr.bf16.mxu1 %v980_v56 }
  0x37   : > { %474 = vmatpush1.bf16.msra.mxu0 %v934_v40 }
  0x38   : > { %475 = vmatprep.subr.bf16.mxu0 %v935_v42  ;;  %725 = vmatpush1.bf16.msra.mxu1 %v982_v57 }
  0x39   : > { %726 = vmatprep.subr.bf16.mxu1 %v983_v58 }
  0x3b   : > { %476 = vmatpush1.bf16.msra.mxu0 %v937_v44 }
  0x3c   : > { %477 = vmatprep.subr.bf16.mxu0 %v938_v46  ;;  %727 = vmatpush1.bf16.msra.mxu1 %v985_v59 }
  0x3d   : > { %728 = vmatprep.subr.bf16.mxu1 %v986_v60 }
  0x3f   : > { %478 = vmatpush1.bf16.msra.mxu0 %v940_v48 }
  0x40   : > { %479 = vmatprep.subr.bf16.mxu0 %v941_v50  ;;  %729 = vmatpush1.bf16.msra.mxu1 %v988_v61 }
  0x41   : > { %730 = vmatprep.subr.bf16.mxu1 %v989_v62 }
  0x43   : > { %480 = vmatpush1.bf16.msra.mxu0 %v943_v52 }
  0x44   : > { %731 = vmatpush1.bf16.msra.mxu1 %v991_v63 }
  0x45   : > { %732 = vmatprep.subr.bf16.mxu1 %v992_v0 }
  0x46   : > { %482 = vmatmul.mubr.bf16.vlgmr.msra.gmra.mrb[0].mxu0 %v944_v54 }
  0x48   : > { %733 = vmatpush1.bf16.msra.mxu1 %v994_v1 }
 0x119   : > { %v483_v9 = vpop.f32.mrb[0].mxu0 }
 0x11a   : > { %v484_v10 = vadd.f32 %v483_v9, %v272_v7  ;;  %v485_v11 = vpop.f32.mrb[1].mxu0 }
 0x11b   : > { %v486_v12 = vadd.f32 %v485_v11, %v276_v8  ;;  %v487_v13 = vpop.f32.mrb[2].mxu0 }
 0x11c   : > { %v488_v14 = vadd.f32 %v487_v13, %v272_v7  ;;  %v489_v15 = vpop.f32.mrb[3].mxu0  ;;  %v492_v17 = vmax.f32 %v484_v10, 0.0 }
 0x11d   : > { %v490_v16 = vadd.f32 %v489_v15, %v276_v8  ;;  %v493_v19 = vmax.f32 %v486_v12, 0.0 }
 0x11e   : > { %v494_v18 = vmax.f32 %v488_v14, 0.0 }
 0x11f   : > { %v495_v20 = vmax.f32 %v490_v16, 0.0 }
 0x120   : > { %v496_v21 = vpack.c.bf16 %v494_v18, %v492_v17 }
 0x121   : > { %v497_v22 = vpack.c.bf16 %v495_v20, %v493_v19 }
 0x123   : > { %734 = vmatprep.mubr.bf16.mxu1 %v497_v22 }
 0x124   : > { %735 = vmatmul.mubr.bf16.vlgmr.msra.gmra.mrb[0].mxu1 %v496_v21 }
 0x1f7   : > { %v736_v26 = vpop.f32.mrb[0].mxu1 }
 0x1f8   : > { %v737_v27 = vadd.f32 %v736_v26, %v535_v24  ;;  %v738_v28 = vpop.f32.mrb[1].mxu1 }
 0x1f9   : > { %v739_v29 = vadd.f32 %v738_v28, %v539_v25  ;;  %v740_v30 = vpop.f32.mrb[2].mxu1 }
 0x1fa   : > { %745 = vst [vmem:[%s231_s25] sm:$0xff] %v737_v27  ;;  %v741_v31 = vadd.f32 %v740_v30, %v535_v24  ;;  %v742_v32 = vpop.f32.mrb[3].mxu1 }
 0x1fb   : > { %746 = vst [vmem:[%s231_s25 + $0x8] sm:$0xff] %v739_v29  ;;  %v743_v33 = vadd.f32 %v742_v32, %v539_v25 }
 0x1fc   : > { %747 = vst [vmem:[%s231_s25 + $0x10] sm:$0xff] %v741_v31 }
 0x1fd   : > { %748 = vst [vmem:[%s231_s25 + $0x18] sm:$0xff] %v743_v33 }
 0x1fe PF: > { %s15_s18 = sadd.s32 1, %s1001_s18  }
 0x1ff   : > { %p12_p4 = scmp.ge.s32.totalorder %s15_s18, 4  }
 0x201   :  { %14 = sbr.rel (!%p12_p4) target bundleno = 1 (0x1), region = 70 }

</bundles_post_ra>
